<compile_context>
chip_gen: v6e
topology: v6e:2x2x1
jax: 0.10.0
libtpu: 0.0.40
codegen_flags: <defaults>
</compile_context>

<pallas_src>
import functools

import jax
import jax.numpy as jnp
from jax.experimental import pallas as pl
from jax.experimental.pallas import tpu as pltpu


_TL_CAP = 8192                         # lane (spatial) tile cap
_TILE_BYTES_TARGET = 8 * 1024 * 1024   # per-input-tile DMA target (4-8 MiB range)


def _cdiv(a, b):
    return -(-a // b)


def _round_up(x, m):
    return (x + m - 1) // m * m


def _sublane_multiple(dtype):
    # 8 sublanes of 32-bit; sub-32-bit dtypes pack along sublanes.
    return 8 * (4 // jnp.dtype(dtype).itemsize)


def _vmem_limit_bytes():
    # Generation-gate the VMEM budget: v7x has 64 MiB/TC, v5e/v6e have 128 MiB.
    try:
        cap = pltpu.get_tpu_info().vmem_capacity_bytes
    except Exception:
        cap = 64 * 1024 * 1024         # assume the smallest (v7x-class)
    return 48 * 1024 * 1024 if cap <= 64 * 1024 * 1024 else 64 * 1024 * 1024


def _choose_tiles(R, L, itemsize, sub):
    """Pick (TR, row_tiles, TL, NL, ncore) for the (R, L) partial-sum grid."""
    L128 = _round_up(L, 128)
    TL0 = min(L128, _TL_CAP)

    # Row tile: sized so one input tile is ~_TILE_BYTES_TARGET, capped at 256
    # rows (keeps the three (TR,128) f32 accumulators cheap), multiple of the
    # sublane packing.  Small R -> full-dim block (always legal).
    tr_cap = (_TILE_BYTES_TARGET // (TL0 * itemsize)) // sub * sub
    tr_cap = max(sub, min(256, tr_cap))
    if R <= tr_cap:
        TR, row_tiles = R, 1
    else:
        TR, row_tiles = tr_cap, _cdiv(R, tr_cap)

    # Spatial tiles.  When rows give no parallelism and the spatial axis is
    # large, force an even tile count so a leading size-2 "parallel" grid axis
    # splits the streaming across both v7x TensorCores.
    if row_tiles == 1 and L128 > _TL_CAP:
        NL = _cdiv(L, _TL_CAP)
        if NL % 2:
            NL += 1
        TL = _round_up(_cdiv(L, NL), 128)
        NL = _cdiv(L, TL)
        ncore = 2 if (NL >= 2 and NL % 2 == 0) else 1
    else:
        TL = TL0
        NL = _cdiv(L, TL)
        ncore = 1
    return TR, row_tiles, TL, NL, ncore


def _make_partials_kernel(TR, TL, L, NL, nl_per_core):
    """Per-row partial sums of m1*m2, m1, m2, kept as 128-lane partials."""
    ragged = (L % TL) != 0

    def kernel(m1_ref, m2_ref, inter_ref, s1_ref, s2_ref):
        c = pl.program_id(0)           # core-split axis (spatial halves)
        l = pl.program_id(2)           # spatial reduction axis (last)

        @pl.when(l == 0)
        def _():
            inter_ref[...] = jnp.zeros_like(inter_ref)
            s1_ref[...] = jnp.zeros_like(s1_ref)
            s2_ref[...] = jnp.zeros_like(s2_ref)

        def accumulate(masked):
            acc_i = jnp.zeros((TR, 128), jnp.float32)
            acc_1 = jnp.zeros((TR, 128), jnp.float32)
            acc_2 = jnp.zeros((TR, 128), jnp.float32)
            if masked:
                lane = jax.lax.broadcasted_iota(jnp.int32, (TR, 128), 1)
                base = (c * nl_per_core + l) * TL
            # Static lane-aligned 128-wide slices: pure VALU adds into
            # 128-lane partial accumulators (no per-step XLU reduce, no
            # materialized (TR, TL) f32 temporaries).
            for off in range(0, TL, 128):
                a = m1_ref[:, off:off + 128].astype(jnp.float32)
                b = m2_ref[:, off:off + 128].astype(jnp.float32)
                if masked:
                    valid = (lane + (base + off)) < L
                    a = jnp.where(valid, a, 0.0)
                    b = jnp.where(valid, b, 0.0)
                acc_i = acc_i + a * b
                acc_1 = acc_1 + a
                acc_2 = acc_2 + b
            inter_ref[...] += acc_i
            s1_ref[...] += acc_1
            s2_ref[...] += acc_2

        if ragged:
            # Only the globally-last spatial tile can read past L.
            is_last = (c * nl_per_core + l) == (NL - 1)

            @pl.when(jnp.logical_not(is_last))
            def _():
                accumulate(masked=False)

            @pl.when(is_last)
            def _():
                accumulate(masked=True)
        else:
            accumulate(masked=False)

    return kernel


def miou_loss(logits, targets, n_classes, *, smooth=1.0):
    """Pallas implementation of mIOULoss.forward (PyTorch semantics)."""
    num = logits.shape[0]
    # Sublane-dense layout: one row per (batch, class) pair; native dtypes
    # stream straight from HBM (cast to f32 happens in-kernel on the VPU).
    m1 = logits.reshape(num * n_classes, -1)
    m2 = targets.reshape(num * n_classes, -1)
    R, L = m1.shape

    itemsize = max(jnp.dtype(m1.dtype).itemsize, jnp.dtype(m2.dtype).itemsize)
    sub = max(_sublane_multiple(m1.dtype), _sublane_multiple(m2.dtype))
    TR, row_tiles, TL, NL, ncore = _choose_tiles(R, L, itemsize, sub)
    nl_per_core = NL // ncore
    R_out = row_tiles * TR

    grid = (ncore, row_tiles, nl_per_core)
    out_sds = jax.ShapeDtypeStruct((ncore, R_out, 128), jnp.float32)
    out_spec = pl.BlockSpec((None, TR, 128), lambda c, r, l: (c, r, 0))
    in_spec = pl.BlockSpec((TR, TL), lambda c, r, l: (r, c * nl_per_core + l))

    bytes_accessed = (
        R * L * (jnp.dtype(m1.dtype).itemsize + jnp.dtype(m2.dtype).itemsize)
        + 3 * ncore * R_out * 128 * 4
    )
    cost = pl.CostEstimate(flops=4 * R * L, transcendentals=0,
                           bytes_accessed=bytes_accessed)

    inter, s1, s2 = pl.pallas_call(
        _make_partials_kernel(TR, TL, L, NL, nl_per_core),
        out_shape=(out_sds, out_sds, out_sds),
        grid_spec=pltpu.PrefetchScalarGridSpec(
            num_scalar_prefetch=0,
            grid=grid,
            in_specs=[in_spec, in_spec],
            out_specs=[out_spec, out_spec, out_spec],
        ),
        compiler_params=pltpu.CompilerParams(
            # Core-split and row axes are independent -> megacore-parallel on
            # v7x; spatial axis is the reduction -> arbitrary, and last.
            dimension_semantics=("parallel", "parallel", "arbitrary"),
            vmem_limit_bytes=_vmem_limit_bytes(),
        ),
        cost_estimate=cost,
    )(m1, m2)

    # Fold the core-split and 128-lane partials; drop padded rows.  This is a
    # few KFLOPs, left to plain JAX.
    inter = inter.sum(axis=0)[:R].sum(axis=-1).reshape(num, n_classes)
    s1 = s1.sum(axis=0)[:R].sum(axis=-1).reshape(num, n_classes)
    s2 = s2.sum(axis=0)[:R].sum(axis=-1).reshape(num, n_classes)

    smooth = jnp.float32(smooth)
    score = (smooth + inter) / (smooth + s1 + s2 - inter)
    score = 1.0 - jnp.sum(score, axis=1) / jnp.float32(n_classes)
    return jnp.sum(score) / jnp.float32(num)


def _miou_ref(logits, targets, n_classes):
    """Pure-JAX reference mirroring the PyTorch module."""
    num = logits.shape[0]
    smooth = 1.0
    m1 = logits.reshape(num, n_classes, -1).astype(jnp.float32)
    m2 = targets.reshape(num, n_classes, -1).astype(jnp.float32)
    inter = (m1 * m2).sum(2)
    score = (smooth + inter) / (smooth + m1.sum(2) + m2.sum(2) - inter)
    score = 1.0 - score.sum(1) / n_classes
    return score.sum() / num


if __name__ == "__main__":
    key = jax.random.PRNGKey(0)

    def run_case(N, C, H, W, case_id):
        k1, k2 = jax.random.split(jax.random.fold_in(key, case_id))
        # logits: softmax probabilities over classes (module expects probs).
        logits = jax.nn.softmax(
            jax.random.normal(k1, (N, C, H, W), jnp.float32), axis=1)
        # targets: one-hot class maps.
        labels = jax.random.randint(k2, (N, H, W), 0, C)
        targets = jax.nn.one_hot(labels, C, axis=1, dtype=jnp.float32)
        loss_fn = jax.jit(functools.partial(miou_loss, n_classes=C))
        loss = jax.block_until_ready(loss_fn(logits, targets))
        ref = _miou_ref(logits, targets, C)
        assert jnp.allclose(loss, ref, rtol=1e-4, atol=1e-5), (
            (N, C, H, W), loss, ref)
        return loss

    # Canonical small case: single tile, unmasked fast path.
    run_case(2, 4, 16, 16, case_id=0)
    # Larger spatial extent: exercises the 2-way core-split grid and the
    # masked ragged-tail path (L = 10000 not a multiple of the tile width).
    run_case(2, 4, 100, 100, case_id=1)

    print("KERNEL_OK")
</pallas_src>

<mosaic_0001>
module attributes {stable_mosaic.version = 11 : i64} {
  func.func @kernel(%arg0: i32, %arg1: i32, %arg2: i32, %arg3: memref<8x256xf32, #tpu.memory_space<vmem>>, %arg4: memref<8x256xf32, #tpu.memory_space<vmem>>, %arg5: memref<1x8x128xf32, #tpu.memory_space<vmem>>, %arg6: memref<1x8x128xf32, #tpu.memory_space<vmem>>, %arg7: memref<1x8x128xf32, #tpu.memory_space<vmem>>) attributes {dimension_semantics = [#tpu.dimension_semantics<parallel>, #tpu.dimension_semantics<parallel>, #tpu.dimension_semantics<arbitrary>], iteration_bounds = array<i64: 1, 1, 1>, scalar_prefetch = 0 : i64, scratch_operands = 0 : i64, tpu.core_type = #tpu.core_type<tc>, window_params = [{transform_indices = @transform_0, window_bounds = array<i64: 8, 256>}, {transform_indices = @transform_1, window_bounds = array<i64: 8, 256>}, {transform_indices = @transform_2, window_bounds = array<i64: 1, 8, 128>}, {transform_indices = @transform_3, window_bounds = array<i64: 1, 8, 128>}, {transform_indices = @transform_4, window_bounds = array<i64: 1, 8, 128>}]} {
    %c0_i32 = arith.constant 0 : i32
    %0 = arith.cmpi eq, %arg2, %c0_i32 : i32
    %1 = arith.extui %0 : i1 to i32
    %c0_i32_0 = arith.constant 0 : i32
    %2 = arith.cmpi ne, %1, %c0_i32_0 : i32
    scf.if %2 {
      %cst_27 = arith.constant 0.000000e+00 : f32
      %36 = vector.broadcast %cst_27 : f32 to vector<8x128xf32>
      %c0_28 = arith.constant 0 : index
      %c0_29 = arith.constant 0 : index
      %c0_30 = arith.constant 0 : index
      %37 = vector.load %arg5[%c0_28, %c0_29, %c0_30] : memref<1x8x128xf32, #tpu.memory_space<vmem>>, vector<1x8x128xf32>
      %38 = vector.shape_cast %37 : vector<1x8x128xf32> to vector<8x128xf32>
      %39 = vector.shape_cast %36 : vector<8x128xf32> to vector<1x8x128xf32>
      tpu.vector_store %arg5[%c0_28, %c0_29, %c0_30], %39 {strides = array<i32>} : memref<1x8x128xf32, #tpu.memory_space<vmem>>, vector<1x8x128xf32>,
      %cst_31 = arith.constant 0.000000e+00 : f32
      %40 = vector.broadcast %cst_31 : f32 to vector<8x128xf32>
      %c0_32 = arith.constant 0 : index
      %c0_33 = arith.constant 0 : index
      %c0_34 = arith.constant 0 : index
      %41 = vector.load %arg6[%c0_32, %c0_33, %c0_34] : memref<1x8x128xf32, #tpu.memory_space<vmem>>, vector<1x8x128xf32>
      %42 = vector.shape_cast %41 : vector<1x8x128xf32> to vector<8x128xf32>
      %43 = vector.shape_cast %40 : vector<8x128xf32> to vector<1x8x128xf32>
      tpu.vector_store %arg6[%c0_32, %c0_33, %c0_34], %43 {strides = array<i32>} : memref<1x8x128xf32, #tpu.memory_space<vmem>>, vector<1x8x128xf32>,
      %cst_35 = arith.constant 0.000000e+00 : f32
      %44 = vector.broadcast %cst_35 : f32 to vector<8x128xf32>
      %c0_36 = arith.constant 0 : index
      %c0_37 = arith.constant 0 : index
      %c0_38 = arith.constant 0 : index
      %45 = vector.load %arg7[%c0_36, %c0_37, %c0_38] : memref<1x8x128xf32, #tpu.memory_space<vmem>>, vector<1x8x128xf32>
      %46 = vector.shape_cast %45 : vector<1x8x128xf32> to vector<8x128xf32>
      %47 = vector.shape_cast %44 : vector<8x128xf32> to vector<1x8x128xf32>
      tpu.vector_store %arg7[%c0_36, %c0_37, %c0_38], %47 {strides = array<i32>} : memref<1x8x128xf32, #tpu.memory_space<vmem>>, vector<1x8x128xf32>,
    } else {
    }
    %cst = arith.constant 0.000000e+00 : f32
    %3 = vector.broadcast %cst : f32 to vector<8x128xf32>
    %cst_1 = arith.constant 0.000000e+00 : f32
    %4 = vector.broadcast %cst_1 : f32 to vector<8x128xf32>
    %cst_2 = arith.constant 0.000000e+00 : f32
    %5 = vector.broadcast %cst_2 : f32 to vector<8x128xf32>
    %c0 = arith.constant 0 : index
    %c0_3 = arith.constant 0 : index
    %6 = vector.load %arg3[%c0, %c0_3] : memref<8x256xf32, #tpu.memory_space<vmem>>, vector<8x128xf32>
    %c0_4 = arith.constant 0 : index
    %c0_5 = arith.constant 0 : index
    %7 = vector.load %arg4[%c0_4, %c0_5] : memref<8x256xf32, #tpu.memory_space<vmem>>, vector<8x128xf32>
    %8 = arith.mulf %6, %7 : vector<8x128xf32>
    %9 = arith.addf %3, %8 : vector<8x128xf32>
    %10 = arith.addf %4, %6 : vector<8x128xf32>
    %11 = arith.addf %5, %7 : vector<8x128xf32>
    %c0_6 = arith.constant 0 : index
    %c128 = arith.constant 128 : index
    %12 = vector.load %arg3[%c0_6, %c128] : memref<8x256xf32, #tpu.memory_space<vmem>>, vector<8x128xf32>
    %c0_7 = arith.constant 0 : index
    %c128_8 = arith.constant 128 : index
    %13 = vector.load %arg4[%c0_7, %c128_8] : memref<8x256xf32, #tpu.memory_space<vmem>>, vector<8x128xf32>
    %14 = arith.mulf %12, %13 : vector<8x128xf32>
    %15 = arith.addf %9, %14 : vector<8x128xf32>
    %16 = arith.addf %10, %12 : vector<8x128xf32>
    %17 = arith.addf %11, %13 : vector<8x128xf32>
    %c0_9 = arith.constant 0 : index
    %c0_10 = arith.constant 0 : index
    %c0_11 = arith.constant 0 : index
    %18 = vector.load %arg5[%c0_9, %c0_10, %c0_11] : memref<1x8x128xf32, #tpu.memory_space<vmem>>, vector<1x8x128xf32>
    %19 = vector.shape_cast %18 : vector<1x8x128xf32> to vector<8x128xf32>
    %20 = arith.addf %19, %15 : vector<8x128xf32>
    %c0_12 = arith.constant 0 : index
    %c0_13 = arith.constant 0 : index
    %c0_14 = arith.constant 0 : index
    %21 = vector.load %arg5[%c0_12, %c0_13, %c0_14] : memref<1x8x128xf32, #tpu.memory_space<vmem>>, vector<1x8x128xf32>
    %22 = vector.shape_cast %21 : vector<1x8x128xf32> to vector<8x128xf32>
    %23 = vector.shape_cast %20 : vector<8x128xf32> to vector<1x8x128xf32>
    tpu.vector_store %arg5[%c0_12, %c0_13, %c0_14], %23 {strides = array<i32>} : memref<1x8x128xf32, #tpu.memory_space<vmem>>, vector<1x8x128xf32>,
    %c0_15 = arith.constant 0 : index
    %c0_16 = arith.constant 0 : index
    %c0_17 = arith.constant 0 : index
    %24 = vector.load %arg6[%c0_15, %c0_16, %c0_17] : memref<1x8x128xf32, #tpu.memory_space<vmem>>, vector<1x8x128xf32>
    %25 = vector.shape_cast %24 : vector<1x8x128xf32> to vector<8x128xf32>
    %26 = arith.addf %25, %16 : vector<8x128xf32>
    %c0_18 = arith.constant 0 : index
    %c0_19 = arith.constant 0 : index
    %c0_20 = arith.constant 0 : index
    %27 = vector.load %arg6[%c0_18, %c0_19, %c0_20] : memref<1x8x128xf32, #tpu.memory_space<vmem>>, vector<1x8x128xf32>
    %28 = vector.shape_cast %27 : vector<1x8x128xf32> to vector<8x128xf32>
    %29 = vector.shape_cast %26 : vector<8x128xf32> to vector<1x8x128xf32>
    tpu.vector_store %arg6[%c0_18, %c0_19, %c0_20], %29 {strides = array<i32>} : memref<1x8x128xf32, #tpu.memory_space<vmem>>, vector<1x8x128xf32>,
    %c0_21 = arith.constant 0 : index
    %c0_22 = arith.constant 0 : index
    %c0_23 = arith.constant 0 : index
    %30 = vector.load %arg7[%c0_21, %c0_22, %c0_23] : memref<1x8x128xf32, #tpu.memory_space<vmem>>, vector<1x8x128xf32>
    %31 = vector.shape_cast %30 : vector<1x8x128xf32> to vector<8x128xf32>
    %32 = arith.addf %31, %17 : vector<8x128xf32>
    %c0_24 = arith.constant 0 : index
    %c0_25 = arith.constant 0 : index
    %c0_26 = arith.constant 0 : index
    %33 = vector.load %arg7[%c0_24, %c0_25, %c0_26] : memref<1x8x128xf32, #tpu.memory_space<vmem>>, vector<1x8x128xf32>
    %34 = vector.shape_cast %33 : vector<1x8x128xf32> to vector<8x128xf32>
    %35 = vector.shape_cast %32 : vector<8x128xf32> to vector<1x8x128xf32>
    tpu.vector_store %arg7[%c0_24, %c0_25, %c0_26], %35 {strides = array<i32>} : memref<1x8x128xf32, #tpu.memory_space<vmem>>, vector<1x8x128xf32>,
    return
  }
  func.func @transform_0(%arg0: i32, %arg1: i32, %arg2: i32) -> (i32, i32) {
    %c1_i32 = arith.constant 1 : i32
    %0 = arith.muli %arg0, %c1_i32 : i32
    %1 = arith.addi %0, %arg2 : i32
    %c0_i32 = arith.constant 0 : i32
    return %arg1, %1 : i32, i32
  }
  func.func @transform_1(%arg0: i32, %arg1: i32, %arg2: i32) -> (i32, i32) {
    %c1_i32 = arith.constant 1 : i32
    %0 = arith.muli %arg0, %c1_i32 : i32
    %1 = arith.addi %0, %arg2 : i32
    %c0_i32 = arith.constant 0 : i32
    return %arg1, %1 : i32, i32
  }
  func.func @transform_2(%arg0: i32, %arg1: i32, %arg2: i32) -> (i32, i32, i32) {
    %c0_i32 = arith.constant 0 : i32
    %c0_i32_0 = arith.constant 0 : i32
    return %arg0, %arg1, %c0_i32 : i32, i32, i32
  }
  func.func @transform_3(%arg0: i32, %arg1: i32, %arg2: i32) -> (i32, i32, i32) {
    %c0_i32 = arith.constant 0 : i32
    %c0_i32_0 = arith.constant 0 : i32
    return %arg0, %arg1, %c0_i32 : i32, i32, i32
  }
  func.func @transform_4(%arg0: i32, %arg1: i32, %arg2: i32) -> (i32, i32, i32) {
    %c0_i32 = arith.constant 0 : i32
    %c0_i32_0 = arith.constant 0 : i32
    return %arg0, %arg1, %c0_i32 : i32, i32, i32
  }
}

</mosaic_0001>

<bundles_post_ra>
// kernel: miou_loss.1
= control target key start
LH: loop header
LB: loop body
LE: loop exit
PB: predicated region body
PF: predicated region fallthrough
CT: control target
= control target key end

     0   :  { %s157_s0 = inlined_call_operand.vmem [shape: f32[8,256], index: 0, kind: input, shape index: {}]   ;;  %s158_s1 = inlined_call_operand.vmem [shape: f32[8,256], index: 1, kind: input, shape index: {}]   ;;  %s159_s3 = inlined_call_operand.vmem [shape: f32[1,8,128], index: 3, kind: output, shape index: {1}]   ;;  %s160_s4 = inlined_call_operand.vmem [shape: f32[1,8,128], index: 4, kind: output, shape index: {2}]   ;;  %s161_s2 = inlined_call_operand.vmem [shape: f32[1,8,128], index: 2, kind: output, shape index: {0}]  }
   0x1   :  { %v65_v0 = vld [vmem:[%s157_s0] sm:$0xff]  ;;  %v71_v2 = vld [vmem:[%s157_s0 + $0x8] sm:$0xff] }
   0x2   :  { %v66_v1 = vld [vmem:[%s158_s1] sm:$0xff]  ;;  %v72_v4 = vld [vmem:[%s158_s1 + $0x8] sm:$0xff]  ;;  %v75_v5 = vadd.f32 %v71_v2, %v65_v0 }
   0x3   :  { %v67_v3 = vmul.f32 %v66_v1, %v65_v0  ;;  %v73_v6 = vmul.f32 %v72_v4, %v71_v2  ;;  %v76_v7 = vadd.f32 %v72_v4, %v66_v1 }
   0x4   :  { %82 = vst [vmem:[%s159_s3] sm:$0xff] %v75_v5 }
   0x5   :  { %v74_v8 = vadd.f32 %v73_v6, %v67_v3  ;;  %85 = vst [vmem:[%s160_s4] sm:$0xff] %v76_v7 }
   0x7   :  { %79 = vst [vmem:[%s161_s2] sm:$0xff] %v74_v8 }

</bundles_post_ra>
